<compile_context>
chip_gen: v5e
topology: v5e:2x2
jax: 0.10.0
libtpu: 0.0.40
codegen_flags: <defaults>
</compile_context>

<pallas_src>
import functools

import jax
import jax.numpy as jnp
from jax.experimental import pallas as pl
from jax.experimental.pallas import tpu as pltpu


# ----------------------------- Pallas kernel --------------------------------

def _ensemble_forward_kernel(x_ref, a_ref,
                             w1s_ref, w1a_ref, b1_ref,
                             w2_ref, b2_ref,
                             w3_ref, b3_ref,
                             w4_ref, b4_ref,
                             in_scale_ref, in_shift_ref,
                             out_scale_ref, out_shift_ref,
                             out_ref, *, min_logvar, max_logvar):
    """Whole ensemble in one invocation.

    x_ref:  (E, B, state_dim) raw states (mu in last column)
    a_ref:  (E, B, 1) int32 action indices
    w1s/w1a: fc_1 weight split into state / action columns (avoids in-kernel concat)
    in_scale/in_shift:  (1, state_dim)  fused state normalization (identity on mu)
    out_scale/out_shift: (1, 2*out)     fused delta denormalization (identity on mu)
    out_ref: (E, B, 2*out) -> [:, :, :out] = denormalized mean, [:, :, out:] = denorm var
    """
    E, B, _ = x_ref.shape
    action_size = w1a_ref.shape[1]
    out2 = out_ref.shape[-1]
    out_size = out2 // 2

    in_scale = in_scale_ref[...]
    in_shift = in_shift_ref[...]
    out_scale = out_scale_ref[...]
    out_shift = out_shift_ref[...]

    # lane mask selecting the logvar half of the fc_4 output (no lane slicing)
    is_var = jax.lax.broadcasted_iota(jnp.int32, (B, out2), 1) >= out_size
    act_iota = jax.lax.broadcasted_iota(jnp.int32, (B, action_size), 1)

    def swish(y):
        return y * jax.nn.sigmoid(y)

    def dot(a, b):
        return jnp.dot(a, b, preferred_element_type=jnp.float32)

    # Unrolled loop over ensemble members; everything is already VMEM resident.
    for e in range(E):
        x = x_ref[e] * in_scale + in_shift                       # (B, state_dim)
        one_hot = (act_iota == a_ref[e]).astype(jnp.float32)     # (B, action_size)

        h = swish(dot(x, w1s_ref[e]) + dot(one_hot, w1a_ref[e]) + b1_ref[e])
        h = swish(dot(h, w2_ref[e]) + b2_ref[e])
        h = swish(dot(h, w3_ref[e]) + b3_ref[e])
        o = dot(h, w4_ref[e]) + b4_ref[e]                        # (B, 2*out)

        logvar = min_logvar + (max_logvar - min_logvar) * jax.nn.sigmoid(o)
        o = jnp.where(is_var, jnp.exp(logvar), o)                # var half squashed
        out_ref[e] = (o * out_scale + out_shift).astype(out_ref.dtype)


def ensemble_model_forward(states, actions, packed, *, out_size,
                           min_logvar=-5.0, max_logvar=-1.0):
    """JAX/Pallas equivalent of EnsembleModel.forward.

    states:  (E, B, state_dim) float32, last column is "mu"
    actions: (E, B) int32 discrete action indices
    packed:  output of pack_params()
    returns: (delta_mean, mu_mu, delta_var, mu_var)
    """
    E, B, _state_dim = states.shape
    actions_i32 = actions.astype(jnp.int32).reshape(E, B, 1)

    inputs = (
        states.astype(jnp.float32), actions_i32,
        packed["w1s"], packed["w1a"], packed["b1"],
        packed["w2"], packed["b2"],
        packed["w3"], packed["b3"],
        packed["w4"], packed["b4"],
        packed["in_scale"], packed["in_shift"],
        packed["out_scale"], packed["out_shift"],
    )

    def full_spec(shape):
        rank = len(shape)
        return pl.BlockSpec(tuple(shape), lambda i, rank=rank: (0,) * rank)

    kernel = functools.partial(_ensemble_forward_kernel,
                               min_logvar=min_logvar, max_logvar=max_logvar)

    out = pl.pallas_call(
        kernel,
        grid=(1,),  # single step: whole ensemble is VMEM-resident
        in_specs=[full_spec(a.shape) for a in inputs],
        out_specs=full_spec((E, B, 2 * out_size)),
        out_shape=jax.ShapeDtypeStruct((E, B, 2 * out_size), jnp.float32),
    )(*inputs)

    # Unavoidable final splits (the module returns four tensors).
    delta_mean = out[..., :out_size - 1]
    mu_mu = out[..., out_size - 1:out_size]
    delta_var = out[..., out_size:2 * out_size - 1]
    mu_var = out[..., 2 * out_size - 1:]
    return delta_mean, mu_mu, delta_var, mu_var


# --------------------------- parameter handling ------------------------------

def _xavier_uniform(key, shape):
    fan_in, fan_out = shape
    limit = (6.0 / (fan_in + fan_out)) ** 0.5
    return jax.random.uniform(key, shape, jnp.float32, -limit, limit)


def _xavier_normal(key, shape):
    fan_in, fan_out = shape
    std = (2.0 / (fan_in + fan_out)) ** 0.5
    return std * jax.random.normal(key, shape, jnp.float32)


def init_params(key, in_size, hidden_size, out_size, ensemble_size):
    """Matches EnsembleDenseLayer.reset_parameters: per-member xavier weights,
    zero biases. fc_1..3 swish (xavier_uniform), fc_4 linear (xavier_normal)."""
    keys = jax.random.split(key, 4 * ensemble_size)

    def stack(init_fn, kslice, shape):
        return jnp.stack([init_fn(k, shape) for k in kslice], axis=0)

    E = ensemble_size
    return {
        "w1": stack(_xavier_uniform, keys[0 * E:1 * E], (in_size, hidden_size)),
        "b1": jnp.zeros((E, 1, hidden_size), jnp.float32),
        "w2": stack(_xavier_uniform, keys[1 * E:2 * E], (hidden_size, hidden_size)),
        "b2": jnp.zeros((E, 1, hidden_size), jnp.float32),
        "w3": stack(_xavier_uniform, keys[2 * E:3 * E], (hidden_size, hidden_size)),
        "b3": jnp.zeros((E, 1, hidden_size), jnp.float32),
        "w4": stack(_xavier_normal, keys[3 * E:4 * E], (hidden_size, 2 * out_size)),
        "b4": jnp.zeros((E, 1, 2 * out_size), jnp.float32),
    }


def pack_params(params, normalizer, state_dim, out_size):
    """One-time prep: split fc_1 weights into state/action halves and fold the
    normalizer into per-lane affine vectors consumed inside the kernel."""
    one = jnp.ones((1,), jnp.float32)
    zero = jnp.zeros((1,), jnp.float32)

    inv_sd = 1.0 / normalizer.state_sd
    # normalize first state_dim-1 columns, pass the trailing mu column through
    in_scale = jnp.concatenate([inv_sd, one])[None, :]                       # (1, state_dim)
    in_shift = jnp.concatenate([-normalizer.state_mean * inv_sd, zero])[None, :]

    # mean half: delta cols * sd + mean, mu col identity
    # var  half: delta cols * sd^2,      mu col identity
    out_scale = jnp.concatenate([normalizer.delta_sd, one,
                                 normalizer.delta_sd ** 2, one])[None, :]    # (1, 2*out)
    out_shift = jnp.concatenate([normalizer.delta_mean, zero,
                                 jnp.zeros((out_size,), jnp.float32)])[None, :]

    w1 = params["w1"]
    return {
        "w1s": w1[:, :state_dim, :],       # acts on [norm_states, mu]
        "w1a": w1[:, state_dim:, :],       # acts on one-hot actions
        "b1": params["b1"], "w2": params["w2"], "b2": params["b2"],
        "w3": params["w3"], "b3": params["b3"],
        "w4": params["w4"], "b4": params["b4"],
        "in_scale": in_scale, "in_shift": in_shift,
        "out_scale": out_scale, "out_shift": out_shift,
    }


# ------------------------------ normalizer -----------------------------------

class SimpleNormalizer:
    """Deterministic stand-in for pmbrl's TransitionNormalizer."""

    def __init__(self, state_dim, delta_dim):
        self.state_mean = 0.1 * jnp.arange(state_dim, dtype=jnp.float32)
        self.state_sd = 1.0 + 0.05 * jnp.arange(state_dim, dtype=jnp.float32)
        self.delta_mean = 0.05 * jnp.arange(delta_dim, dtype=jnp.float32)
        self.delta_sd = 1.0 + 0.1 * jnp.arange(delta_dim, dtype=jnp.float32)

    def normalize_states(self, s):
        return (s - self.state_mean) / self.state_sd

    def denormalize_state_delta_means(self, m):
        return m * self.delta_sd + self.delta_mean

    def denormalize_state_delta_vars(self, v):
        return v * (self.delta_sd ** 2)


# --------------------------------- reference ---------------------------------

def _reference_forward(states, actions, params, normalizer, action_size,
                       out_size, min_logvar=-5.0, max_logvar=-1.0):
    raw, mus = states[..., :-1], states[..., -1:]
    norm = normalizer.normalize_states(raw)
    one_hot = jax.nn.one_hot(actions, action_size, dtype=jnp.float32)
    inp = jnp.concatenate([norm, mus, one_hot], axis=-1)

    def dense(h, w, b):
        return jnp.einsum("ebi,eio->ebo", h, w, precision="highest") + b

    def swish(y):
        return y * jax.nn.sigmoid(y)

    h = swish(dense(inp, params["w1"], params["b1"]))
    h = swish(dense(h, params["w2"], params["b2"]))
    h = swish(dense(h, params["w3"], params["b3"]))
    o = dense(h, params["w4"], params["b4"])
    mean, logvar = o[..., :out_size], o[..., out_size:]
    logvar = min_logvar + (max_logvar - min_logvar) * jax.nn.sigmoid(logvar)
    var = jnp.exp(logvar)
    delta_mean = normalizer.denormalize_state_delta_means(mean[..., :-1])
    delta_var = normalizer.denormalize_state_delta_vars(var[..., :-1])
    return delta_mean, mean[..., -1:], delta_var, var[..., -1:]


# ----------------------------------- main -------------------------------------

if __name__ == "__main__":
    ensemble_size = 3
    batch = 8
    state_dim = 6            # includes the trailing "mu" column
    action_size = 4
    hidden_size = 32
    out_size = state_dim     # state-delta dim + mu dim
    in_size = state_dim + action_size

    key = jax.random.PRNGKey(0)
    k_param, k_states, k_actions = jax.random.split(key, 3)

    params = init_params(k_param, in_size, hidden_size, out_size, ensemble_size)
    normalizer = SimpleNormalizer(state_dim - 1, out_size - 1)
    packed = pack_params(params, normalizer, state_dim, out_size)

    states = jax.random.normal(k_states, (ensemble_size, batch, state_dim),
                               dtype=jnp.float32)
    actions = jax.random.randint(k_actions, (ensemble_size, batch), 0, action_size)

    fwd = jax.jit(functools.partial(ensemble_model_forward, out_size=out_size))
    outs = fwd(states, actions, packed)
    jax.block_until_ready(outs)

    refs = _reference_forward(states, actions, params, normalizer,
                              action_size, out_size)
    names = ("delta_mean", "mu_mu", "delta_var", "mu_var")
    for name, got, ref in zip(names, outs, refs):
        assert jnp.allclose(got, ref, rtol=1e-3, atol=1e-3), name

    print("KERNEL_OK")
</pallas_src>

<mosaic_0001>
module attributes {stable_mosaic.version = 11 : i64} {
  func.func @_ensemble_forward_kernel(%arg0: i32, %arg1: memref<3x8x6xf32, #tpu.memory_space<vmem>>, %arg2: memref<3x8x1xi32, #tpu.memory_space<vmem>>, %arg3: memref<3x6x32xf32, #tpu.memory_space<vmem>>, %arg4: memref<3x4x32xf32, #tpu.memory_space<vmem>>, %arg5: memref<3x1x32xf32, #tpu.memory_space<vmem>>, %arg6: memref<3x32x32xf32, #tpu.memory_space<vmem>>, %arg7: memref<3x1x32xf32, #tpu.memory_space<vmem>>, %arg8: memref<3x32x32xf32, #tpu.memory_space<vmem>>, %arg9: memref<3x1x32xf32, #tpu.memory_space<vmem>>, %arg10: memref<3x32x12xf32, #tpu.memory_space<vmem>>, %arg11: memref<3x1x12xf32, #tpu.memory_space<vmem>>, %arg12: memref<1x6xf32, #tpu.memory_space<vmem>>, %arg13: memref<1x6xf32, #tpu.memory_space<vmem>>, %arg14: memref<1x12xf32, #tpu.memory_space<vmem>>, %arg15: memref<1x12xf32, #tpu.memory_space<vmem>>, %arg16: memref<3x8x12xf32, #tpu.memory_space<vmem>>) attributes {dimension_semantics = [#tpu.dimension_semantics<arbitrary>], iteration_bounds = array<i64: 1>, scalar_prefetch = 0 : i64, scratch_operands = 0 : i64, tpu.core_type = #tpu.core_type<tc>, window_params = [{pipeline_mode = #tpu.pipeline_mode<synchronous>, transform_indices = @transform_0, window_bounds = array<i64: 3, 8, 6>}, {pipeline_mode = #tpu.pipeline_mode<synchronous>, transform_indices = @transform_1, window_bounds = array<i64: 3, 8, 1>}, {pipeline_mode = #tpu.pipeline_mode<synchronous>, transform_indices = @transform_2, window_bounds = array<i64: 3, 6, 32>}, {pipeline_mode = #tpu.pipeline_mode<synchronous>, transform_indices = @transform_3, window_bounds = array<i64: 3, 4, 32>}, {pipeline_mode = #tpu.pipeline_mode<synchronous>, transform_indices = @transform_4, window_bounds = array<i64: 3, 1, 32>}, {pipeline_mode = #tpu.pipeline_mode<synchronous>, transform_indices = @transform_5, window_bounds = array<i64: 3, 32, 32>}, {pipeline_mode = #tpu.pipeline_mode<synchronous>, transform_indices = @transform_6, window_bounds = array<i64: 3, 1, 32>}, {pipeline_mode = #tpu.pipeline_mode<synchronous>, transform_indices = @transform_7, window_bounds = array<i64: 3, 32, 32>}, {pipeline_mode = #tpu.pipeline_mode<synchronous>, transform_indices = @transform_8, window_bounds = array<i64: 3, 1, 32>}, {pipeline_mode = #tpu.pipeline_mode<synchronous>, transform_indices = @transform_9, window_bounds = array<i64: 3, 32, 12>}, {pipeline_mode = #tpu.pipeline_mode<synchronous>, transform_indices = @transform_10, window_bounds = array<i64: 3, 1, 12>}, {pipeline_mode = #tpu.pipeline_mode<synchronous>, transform_indices = @transform_11, window_bounds = array<i64: 1, 6>}, {pipeline_mode = #tpu.pipeline_mode<synchronous>, transform_indices = @transform_12, window_bounds = array<i64: 1, 6>}, {pipeline_mode = #tpu.pipeline_mode<synchronous>, transform_indices = @transform_13, window_bounds = array<i64: 1, 12>}, {pipeline_mode = #tpu.pipeline_mode<synchronous>, transform_indices = @transform_14, window_bounds = array<i64: 1, 12>}, {pipeline_mode = #tpu.pipeline_mode<synchronous>, transform_indices = @transform_15, window_bounds = array<i64: 3, 8, 12>}]} {
    %c0 = arith.constant 0 : index
    %c0_0 = arith.constant 0 : index
    %0 = vector.load %arg12[%c0, %c0_0] : memref<1x6xf32, #tpu.memory_space<vmem>>, vector<1x6xf32>
    %c0_1 = arith.constant 0 : index
    %c0_2 = arith.constant 0 : index
    %1 = vector.load %arg13[%c0_1, %c0_2] : memref<1x6xf32, #tpu.memory_space<vmem>>, vector<1x6xf32>
    %c0_3 = arith.constant 0 : index
    %c0_4 = arith.constant 0 : index
    %2 = vector.load %arg14[%c0_3, %c0_4] : memref<1x12xf32, #tpu.memory_space<vmem>>, vector<1x12xf32>
    %c0_5 = arith.constant 0 : index
    %c0_6 = arith.constant 0 : index
    %3 = vector.load %arg15[%c0_5, %c0_6] : memref<1x12xf32, #tpu.memory_space<vmem>>, vector<1x12xf32>
    %4 = tpu.iota {dimensions = array<i32: 1>} : vector<8x12xi32>
    %c6_i32 = arith.constant 6 : i32
    %5 = vector.broadcast %c6_i32 : i32 to vector<8x12xi32>
    %6 = arith.cmpi sge, %4, %5 : vector<8x12xi32>
    %7 = tpu.iota {dimensions = array<i32: 1>} : vector<8x4xi32>
    %c0_7 = arith.constant 0 : index
    %c0_8 = arith.constant 0 : index
    %c0_9 = arith.constant 0 : index
    %8 = vector.load %arg1[%c0_7, %c0_8, %c0_9] : memref<3x8x6xf32, #tpu.memory_space<vmem>>, vector<1x8x6xf32>
    %9 = vector.shape_cast %8 : vector<1x8x6xf32> to vector<8x6xf32>
    %10 = vector.broadcast %0 : vector<1x6xf32> to vector<8x6xf32>
    %11 = arith.mulf %9, %10 : vector<8x6xf32>
    %12 = vector.broadcast %1 : vector<1x6xf32> to vector<8x6xf32>
    %13 = arith.addf %11, %12 : vector<8x6xf32>
    %c0_10 = arith.constant 0 : index
    %c0_11 = arith.constant 0 : index
    %c0_12 = arith.constant 0 : index
    %14 = vector.load %arg2[%c0_10, %c0_11, %c0_12] : memref<3x8x1xi32, #tpu.memory_space<vmem>>, vector<1x8x1xi32>
    %15 = vector.shape_cast %14 : vector<1x8x1xi32> to vector<8x1xi32>
    %16 = vector.broadcast %15 : vector<8x1xi32> to vector<8x4xi32>
    %17 = arith.cmpi eq, %7, %16 : vector<8x4xi32>
    %18 = arith.extui %17 : vector<8x4xi1> to vector<8x4xi32>
    %19 = arith.sitofp %18 : vector<8x4xi32> to vector<8x4xf32>
    %c0_13 = arith.constant 0 : index
    %c0_14 = arith.constant 0 : index
    %c0_15 = arith.constant 0 : index
    %20 = vector.load %arg3[%c0_13, %c0_14, %c0_15] : memref<3x6x32xf32, #tpu.memory_space<vmem>>, vector<1x6x32xf32>
    %21 = vector.shape_cast %20 : vector<1x6x32xf32> to vector<6x32xf32>
    %cst = arith.constant dense<0.000000e+00> : vector<8x32xf32>
    %22 = tpu.matmul %13, %21, %cst {dimension_numbers = #tpu.dot_dimension_numbers<[1], [0], [0], [1], [0, 0, 1, 1], [], []>} : vector<8x6xf32>, vector<6x32xf32>, vector<8x32xf32> -> vector<8x32xf32>
    %c0_16 = arith.constant 0 : index
    %c0_17 = arith.constant 0 : index
    %c0_18 = arith.constant 0 : index
    %23 = vector.load %arg4[%c0_16, %c0_17, %c0_18] : memref<3x4x32xf32, #tpu.memory_space<vmem>>, vector<1x4x32xf32>
    %24 = vector.shape_cast %23 : vector<1x4x32xf32> to vector<4x32xf32>
    %cst_19 = arith.constant dense<0.000000e+00> : vector<8x32xf32>
    %25 = tpu.matmul %19, %24, %cst_19 {dimension_numbers = #tpu.dot_dimension_numbers<[1], [0], [0], [1], [0, 0, 1, 1], [], []>} : vector<8x4xf32>, vector<4x32xf32>, vector<8x32xf32> -> vector<8x32xf32>
    %26 = arith.addf %22, %25 : vector<8x32xf32>
    %c0_20 = arith.constant 0 : index
    %c0_21 = arith.constant 0 : index
    %c0_22 = arith.constant 0 : index
    %27 = vector.load %arg5[%c0_20, %c0_21, %c0_22] : memref<3x1x32xf32, #tpu.memory_space<vmem>>, vector<1x1x32xf32>
    %28 = vector.shape_cast %27 : vector<1x1x32xf32> to vector<1x32xf32>
    %29 = vector.broadcast %28 : vector<1x32xf32> to vector<8x32xf32>
    %30 = arith.addf %26, %29 : vector<8x32xf32>
    %31 = arith.negf %30 : vector<8x32xf32>
    %32 = math.exp %31 : vector<8x32xf32>
    %cst_23 = arith.constant 1.000000e+00 : f32
    %33 = vector.broadcast %cst_23 : f32 to vector<8x32xf32>
    %34 = arith.addf %33, %32 : vector<8x32xf32>
    %35 = arith.divf %33, %34 : vector<8x32xf32>
    %36 = arith.mulf %30, %35 : vector<8x32xf32>
    %c0_24 = arith.constant 0 : index
    %c0_25 = arith.constant 0 : index
    %c0_26 = arith.constant 0 : index
    %37 = vector.load %arg6[%c0_24, %c0_25, %c0_26] : memref<3x32x32xf32, #tpu.memory_space<vmem>>, vector<1x32x32xf32>
    %38 = vector.shape_cast %37 : vector<1x32x32xf32> to vector<32x32xf32>
    %cst_27 = arith.constant dense<0.000000e+00> : vector<8x32xf32>
    %39 = tpu.matmul %36, %38, %cst_27 {dimension_numbers = #tpu.dot_dimension_numbers<[1], [0], [0], [1], [0, 0, 1, 1], [], []>} : vector<8x32xf32>, vector<32x32xf32>, vector<8x32xf32> -> vector<8x32xf32>
    %c0_28 = arith.constant 0 : index
    %c0_29 = arith.constant 0 : index
    %c0_30 = arith.constant 0 : index
    %40 = vector.load %arg7[%c0_28, %c0_29, %c0_30] : memref<3x1x32xf32, #tpu.memory_space<vmem>>, vector<1x1x32xf32>
    %41 = vector.shape_cast %40 : vector<1x1x32xf32> to vector<1x32xf32>
    %42 = vector.broadcast %41 : vector<1x32xf32> to vector<8x32xf32>
    %43 = arith.addf %39, %42 : vector<8x32xf32>
    %44 = arith.negf %43 : vector<8x32xf32>
    %45 = math.exp %44 : vector<8x32xf32>
    %cst_31 = arith.constant 1.000000e+00 : f32
    %46 = vector.broadcast %cst_31 : f32 to vector<8x32xf32>
    %47 = arith.addf %46, %45 : vector<8x32xf32>
    %48 = arith.divf %46, %47 : vector<8x32xf32>
    %49 = arith.mulf %43, %48 : vector<8x32xf32>
    %c0_32 = arith.constant 0 : index
    %c0_33 = arith.constant 0 : index
    %c0_34 = arith.constant 0 : index
    %50 = vector.load %arg8[%c0_32, %c0_33, %c0_34] : memref<3x32x32xf32, #tpu.memory_space<vmem>>, vector<1x32x32xf32>
    %51 = vector.shape_cast %50 : vector<1x32x32xf32> to vector<32x32xf32>
    %cst_35 = arith.constant dense<0.000000e+00> : vector<8x32xf32>
    %52 = tpu.matmul %49, %51, %cst_35 {dimension_numbers = #tpu.dot_dimension_numbers<[1], [0], [0], [1], [0, 0, 1, 1], [], []>} : vector<8x32xf32>, vector<32x32xf32>, vector<8x32xf32> -> vector<8x32xf32>
    %c0_36 = arith.constant 0 : index
    %c0_37 = arith.constant 0 : index
    %c0_38 = arith.constant 0 : index
    %53 = vector.load %arg9[%c0_36, %c0_37, %c0_38] : memref<3x1x32xf32, #tpu.memory_space<vmem>>, vector<1x1x32xf32>
    %54 = vector.shape_cast %53 : vector<1x1x32xf32> to vector<1x32xf32>
    %55 = vector.broadcast %54 : vector<1x32xf32> to vector<8x32xf32>
    %56 = arith.addf %52, %55 : vector<8x32xf32>
    %57 = arith.negf %56 : vector<8x32xf32>
    %58 = math.exp %57 : vector<8x32xf32>
    %cst_39 = arith.constant 1.000000e+00 : f32
    %59 = vector.broadcast %cst_39 : f32 to vector<8x32xf32>
    %60 = arith.addf %59, %58 : vector<8x32xf32>
    %61 = arith.divf %59, %60 : vector<8x32xf32>
    %62 = arith.mulf %56, %61 : vector<8x32xf32>
    %c0_40 = arith.constant 0 : index
    %c0_41 = arith.constant 0 : index
    %c0_42 = arith.constant 0 : index
    %63 = vector.load %arg10[%c0_40, %c0_41, %c0_42] : memref<3x32x12xf32, #tpu.memory_space<vmem>>, vector<1x32x12xf32>
    %64 = vector.shape_cast %63 : vector<1x32x12xf32> to vector<32x12xf32>
    %cst_43 = arith.constant dense<0.000000e+00> : vector<8x12xf32>
    %65 = tpu.matmul %62, %64, %cst_43 {dimension_numbers = #tpu.dot_dimension_numbers<[1], [0], [0], [1], [0, 0, 1, 1], [], []>} : vector<8x32xf32>, vector<32x12xf32>, vector<8x12xf32> -> vector<8x12xf32>
    %c0_44 = arith.constant 0 : index
    %c0_45 = arith.constant 0 : index
    %c0_46 = arith.constant 0 : index
    %66 = vector.load %arg11[%c0_44, %c0_45, %c0_46] : memref<3x1x12xf32, #tpu.memory_space<vmem>>, vector<1x1x12xf32>
    %67 = vector.shape_cast %66 : vector<1x1x12xf32> to vector<1x12xf32>
    %68 = vector.broadcast %67 : vector<1x12xf32> to vector<8x12xf32>
    %69 = arith.addf %65, %68 : vector<8x12xf32>
    %70 = arith.negf %69 : vector<8x12xf32>
    %71 = math.exp %70 : vector<8x12xf32>
    %cst_47 = arith.constant 1.000000e+00 : f32
    %72 = vector.broadcast %cst_47 : f32 to vector<8x12xf32>
    %73 = arith.addf %72, %71 : vector<8x12xf32>
    %74 = arith.divf %72, %73 : vector<8x12xf32>
    %cst_48 = arith.constant 4.000000e+00 : f32
    %75 = vector.broadcast %cst_48 : f32 to vector<8x12xf32>
    %76 = arith.mulf %75, %74 : vector<8x12xf32>
    %cst_49 = arith.constant -5.000000e+00 : f32
    %77 = vector.broadcast %cst_49 : f32 to vector<8x12xf32>
    %78 = arith.addf %77, %76 : vector<8x12xf32>
    %79 = math.exp %78 : vector<8x12xf32>
    %80 = arith.select %6, %79, %69 : vector<8x12xi1>, vector<8x12xf32>
    %81 = vector.broadcast %2 : vector<1x12xf32> to vector<8x12xf32>
    %82 = arith.mulf %80, %81 : vector<8x12xf32>
    %83 = vector.broadcast %3 : vector<1x12xf32> to vector<8x12xf32>
    %84 = arith.addf %82, %83 : vector<8x12xf32>
    %c0_50 = arith.constant 0 : index
    %c0_51 = arith.constant 0 : index
    %c0_52 = arith.constant 0 : index
    %85 = vector.load %arg16[%c0_50, %c0_51, %c0_52] : memref<3x8x12xf32, #tpu.memory_space<vmem>>, vector<1x8x12xf32>
    %86 = vector.shape_cast %85 : vector<1x8x12xf32> to vector<8x12xf32>
    %87 = vector.shape_cast %84 : vector<8x12xf32> to vector<1x8x12xf32>
    tpu.vector_store %arg16[%c0_50, %c0_51, %c0_52], %87 {strides = array<i32>} : memref<3x8x12xf32, #tpu.memory_space<vmem>>, vector<1x8x12xf32>,
    %c1 = arith.constant 1 : index
    %c0_53 = arith.constant 0 : index
    %c0_54 = arith.constant 0 : index
    %88 = vector.load %arg1[%c1, %c0_53, %c0_54] : memref<3x8x6xf32, #tpu.memory_space<vmem>>, vector<1x8x6xf32>
    %89 = vector.shape_cast %88 : vector<1x8x6xf32> to vector<8x6xf32>
    %90 = vector.broadcast %0 : vector<1x6xf32> to vector<8x6xf32>
    %91 = arith.mulf %89, %90 : vector<8x6xf32>
    %92 = vector.broadcast %1 : vector<1x6xf32> to vector<8x6xf32>
    %93 = arith.addf %91, %92 : vector<8x6xf32>
    %c1_55 = arith.constant 1 : index
    %c0_56 = arith.constant 0 : index
    %c0_57 = arith.constant 0 : index
    %94 = vector.load %arg2[%c1_55, %c0_56, %c0_57] : memref<3x8x1xi32, #tpu.memory_space<vmem>>, vector<1x8x1xi32>
    %95 = vector.shape_cast %94 : vector<1x8x1xi32> to vector<8x1xi32>
    %96 = vector.broadcast %95 : vector<8x1xi32> to vector<8x4xi32>
    %97 = arith.cmpi eq, %7, %96 : vector<8x4xi32>
    %98 = arith.extui %97 : vector<8x4xi1> to vector<8x4xi32>
    %99 = arith.sitofp %98 : vector<8x4xi32> to vector<8x4xf32>
    %c1_58 = arith.constant 1 : index
    %c0_59 = arith.constant 0 : index
    %c0_60 = arith.constant 0 : index
    %100 = vector.load %arg3[%c1_58, %c0_59, %c0_60] : memref<3x6x32xf32, #tpu.memory_space<vmem>>, vector<1x6x32xf32>
    %101 = vector.shape_cast %100 : vector<1x6x32xf32> to vector<6x32xf32>
    %cst_61 = arith.constant dense<0.000000e+00> : vector<8x32xf32>
    %102 = tpu.matmul %93, %101, %cst_61 {dimension_numbers = #tpu.dot_dimension_numbers<[1], [0], [0], [1], [0, 0, 1, 1], [], []>} : vector<8x6xf32>, vector<6x32xf32>, vector<8x32xf32> -> vector<8x32xf32>
    %c1_62 = arith.constant 1 : index
    %c0_63 = arith.constant 0 : index
    %c0_64 = arith.constant 0 : index
    %103 = vector.load %arg4[%c1_62, %c0_63, %c0_64] : memref<3x4x32xf32, #tpu.memory_space<vmem>>, vector<1x4x32xf32>
    %104 = vector.shape_cast %103 : vector<1x4x32xf32> to vector<4x32xf32>
    %cst_65 = arith.constant dense<0.000000e+00> : vector<8x32xf32>
    %105 = tpu.matmul %99, %104, %cst_65 {dimension_numbers = #tpu.dot_dimension_numbers<[1], [0], [0], [1], [0, 0, 1, 1], [], []>} : vector<8x4xf32>, vector<4x32xf32>, vector<8x32xf32> -> vector<8x32xf32>
    %106 = arith.addf %102, %105 : vector<8x32xf32>
    %c1_66 = arith.constant 1 : index
    %c0_67 = arith.constant 0 : index
    %c0_68 = arith.constant 0 : index
    %107 = vector.load %arg5[%c1_66, %c0_67, %c0_68] : memref<3x1x32xf32, #tpu.memory_space<vmem>>, vector<1x1x32xf32>
    %108 = vector.shape_cast %107 : vector<1x1x32xf32> to vector<1x32xf32>
    %109 = vector.broadcast %108 : vector<1x32xf32> to vector<8x32xf32>
    %110 = arith.addf %106, %109 : vector<8x32xf32>
    %111 = arith.negf %110 : vector<8x32xf32>
    %112 = math.exp %111 : vector<8x32xf32>
    %cst_69 = arith.constant 1.000000e+00 : f32
    %113 = vector.broadcast %cst_69 : f32 to vector<8x32xf32>
    %114 = arith.addf %113, %112 : vector<8x32xf32>
    %115 = arith.divf %113, %114 : vector<8x32xf32>
    %116 = arith.mulf %110, %115 : vector<8x32xf32>
    %c1_70 = arith.constant 1 : index
    %c0_71 = arith.constant 0 : index
    %c0_72 = arith.constant 0 : index
    %117 = vector.load %arg6[%c1_70, %c0_71, %c0_72] : memref<3x32x32xf32, #tpu.memory_space<vmem>>, vector<1x32x32xf32>
    %118 = vector.shape_cast %117 : vector<1x32x32xf32> to vector<32x32xf32>
    %cst_73 = arith.constant dense<0.000000e+00> : vector<8x32xf32>
    %119 = tpu.matmul %116, %118, %cst_73 {dimension_numbers = #tpu.dot_dimension_numbers<[1], [0], [0], [1], [0, 0, 1, 1], [], []>} : vector<8x32xf32>, vector<32x32xf32>, vector<8x32xf32> -> vector<8x32xf32>
    %c1_74 = arith.constant 1 : index
    %c0_75 = arith.constant 0 : index
    %c0_76 = arith.constant 0 : index
    %120 = vector.load %arg7[%c1_74, %c0_75, %c0_76] : memref<3x1x32xf32, #tpu.memory_space<vmem>>, vector<1x1x32xf32>
    %121 = vector.shape_cast %120 : vector<1x1x32xf32> to vector<1x32xf32>
    %122 = vector.broadcast %121 : vector<1x32xf32> to vector<8x32xf32>
    %123 = arith.addf %119, %122 : vector<8x32xf32>
    %124 = arith.negf %123 : vector<8x32xf32>
    %125 = math.exp %124 : vector<8x32xf32>
    %cst_77 = arith.constant 1.000000e+00 : f32
    %126 = vector.broadcast %cst_77 : f32 to vector<8x32xf32>
    %127 = arith.addf %126, %125 : vector<8x32xf32>
    %128 = arith.divf %126, %127 : vector<8x32xf32>
    %129 = arith.mulf %123, %128 : vector<8x32xf32>
    %c1_78 = arith.constant 1 : index
    %c0_79 = arith.constant 0 : index
    %c0_80 = arith.constant 0 : index
    %130 = vector.load %arg8[%c1_78, %c0_79, %c0_80] : memref<3x32x32xf32, #tpu.memory_space<vmem>>, vector<1x32x32xf32>
    %131 = vector.shape_cast %130 : vector<1x32x32xf32> to vector<32x32xf32>
    %cst_81 = arith.constant dense<0.000000e+00> : vector<8x32xf32>
    %132 = tpu.matmul %129, %131, %cst_81 {dimension_numbers = #tpu.dot_dimension_numbers<[1], [0], [0], [1], [0, 0, 1, 1], [], []>} : vector<8x32xf32>, vector<32x32xf32>, vector<8x32xf32> -> vector<8x32xf32>
    %c1_82 = arith.constant 1 : index
    %c0_83 = arith.constant 0 : index
    %c0_84 = arith.constant 0 : index
    %133 = vector.load %arg9[%c1_82, %c0_83, %c0_84] : memref<3x1x32xf32, #tpu.memory_space<vmem>>, vector<1x1x32xf32>
    %134 = vector.shape_cast %133 : vector<1x1x32xf32> to vector<1x32xf32>
    %135 = vector.broadcast %134 : vector<1x32xf32> to vector<8x32xf32>
    %136 = arith.addf %132, %135 : vector<8x32xf32>
    %137 = arith.negf %136 : vector<8x32xf32>
    %138 = math.exp %137 : vector<8x32xf32>
    %cst_85 = arith.constant 1.000000e+00 : f32
    %139 = vector.broadcast %cst_85 : f32 to vector<8x32xf32>
    %140 = arith.addf %139, %138 : vector<8x32xf32>
    %141 = arith.divf %139, %140 : vector<8x32xf32>
    %142 = arith.mulf %136, %141 : vector<8x32xf32>
    %c1_86 = arith.constant 1 : index
    %c0_87 = arith.constant 0 : index
    %c0_88 = arith.constant 0 : index
    %143 = vector.load %arg10[%c1_86, %c0_87, %c0_88] : memref<3x32x12xf32, #tpu.memory_space<vmem>>, vector<1x32x12xf32>
    %144 = vector.shape_cast %143 : vector<1x32x12xf32> to vector<32x12xf32>
    %cst_89 = arith.constant dense<0.000000e+00> : vector<8x12xf32>
    %145 = tpu.matmul %142, %144, %cst_89 {dimension_numbers = #tpu.dot_dimension_numbers<[1], [0], [0], [1], [0, 0, 1, 1], [], []>} : vector<8x32xf32>, vector<32x12xf32>, vector<8x12xf32> -> vector<8x12xf32>
    %c1_90 = arith.constant 1 : index
    %c0_91 = arith.constant 0 : index
    %c0_92 = arith.constant 0 : index
    %146 = vector.load %arg11[%c1_90, %c0_91, %c0_92] : memref<3x1x12xf32, #tpu.memory_space<vmem>>, vector<1x1x12xf32>
    %147 = vector.shape_cast %146 : vector<1x1x12xf32> to vector<1x12xf32>
    %148 = vector.broadcast %147 : vector<1x12xf32> to vector<8x12xf32>
    %149 = arith.addf %145, %148 : vector<8x12xf32>
    %150 = arith.negf %149 : vector<8x12xf32>
    %151 = math.exp %150 : vector<8x12xf32>
    %cst_93 = arith.constant 1.000000e+00 : f32
    %152 = vector.broadcast %cst_93 : f32 to vector<8x12xf32>
    %153 = arith.addf %152, %151 : vector<8x12xf32>
    %154 = arith.divf %152, %153 : vector<8x12xf32>
    %cst_94 = arith.constant 4.000000e+00 : f32
    %155 = vector.broadcast %cst_94 : f32 to vector<8x12xf32>
    %156 = arith.mulf %155, %154 : vector<8x12xf32>
    %cst_95 = arith.constant -5.000000e+00 : f32
    %157 = vector.broadcast %cst_95 : f32 to vector<8x12xf32>
    %158 = arith.addf %157, %156 : vector<8x12xf32>
    %159 = math.exp %158 : vector<8x12xf32>
    %160 = arith.select %6, %159, %149 : vector<8x12xi1>, vector<8x12xf32>
    %161 = vector.broadcast %2 : vector<1x12xf32> to vector<8x12xf32>
    %162 = arith.mulf %160, %161 : vector<8x12xf32>
    %163 = vector.broadcast %3 : vector<1x12xf32> to vector<8x12xf32>
    %164 = arith.addf %162, %163 : vector<8x12xf32>
    %c1_96 = arith.constant 1 : index
    %c0_97 = arith.constant 0 : index
    %c0_98 = arith.constant 0 : index
    %165 = vector.load %arg16[%c1_96, %c0_97, %c0_98] : memref<3x8x12xf32, #tpu.memory_space<vmem>>, vector<1x8x12xf32>
    %166 = vector.shape_cast %165 : vector<1x8x12xf32> to vector<8x12xf32>
    %167 = vector.shape_cast %164 : vector<8x12xf32> to vector<1x8x12xf32>
    tpu.vector_store %arg16[%c1_96, %c0_97, %c0_98], %167 {strides = array<i32>} : memref<3x8x12xf32, #tpu.memory_space<vmem>>, vector<1x8x12xf32>,
    %c2 = arith.constant 2 : index
    %c0_99 = arith.constant 0 : index
    %c0_100 = arith.constant 0 : index
    %168 = vector.load %arg1[%c2, %c0_99, %c0_100] : memref<3x8x6xf32, #tpu.memory_space<vmem>>, vector<1x8x6xf32>
    %169 = vector.shape_cast %168 : vector<1x8x6xf32> to vector<8x6xf32>
    %170 = vector.broadcast %0 : vector<1x6xf32> to vector<8x6xf32>
    %171 = arith.mulf %169, %170 : vector<8x6xf32>
    %172 = vector.broadcast %1 : vector<1x6xf32> to vector<8x6xf32>
    %173 = arith.addf %171, %172 : vector<8x6xf32>
    %c2_101 = arith.constant 2 : index
    %c0_102 = arith.constant 0 : index
    %c0_103 = arith.constant 0 : index
    %174 = vector.load %arg2[%c2_101, %c0_102, %c0_103] : memref<3x8x1xi32, #tpu.memory_space<vmem>>, vector<1x8x1xi32>
    %175 = vector.shape_cast %174 : vector<1x8x1xi32> to vector<8x1xi32>
    %176 = vector.broadcast %175 : vector<8x1xi32> to vector<8x4xi32>
    %177 = arith.cmpi eq, %7, %176 : vector<8x4xi32>
    %178 = arith.extui %177 : vector<8x4xi1> to vector<8x4xi32>
    %179 = arith.sitofp %178 : vector<8x4xi32> to vector<8x4xf32>
    %c2_104 = arith.constant 2 : index
    %c0_105 = arith.constant 0 : index
    %c0_106 = arith.constant 0 : index
    %180 = vector.load %arg3[%c2_104, %c0_105, %c0_106] : memref<3x6x32xf32, #tpu.memory_space<vmem>>, vector<1x6x32xf32>
    %181 = vector.shape_cast %180 : vector<1x6x32xf32> to vector<6x32xf32>
    %cst_107 = arith.constant dense<0.000000e+00> : vector<8x32xf32>
    %182 = tpu.matmul %173, %181, %cst_107 {dimension_numbers = #tpu.dot_dimension_numbers<[1], [0], [0], [1], [0, 0, 1, 1], [], []>} : vector<8x6xf32>, vector<6x32xf32>, vector<8x32xf32> -> vector<8x32xf32>
    %c2_108 = arith.constant 2 : index
    %c0_109 = arith.constant 0 : index
    %c0_110 = arith.constant 0 : index
    %183 = vector.load %arg4[%c2_108, %c0_109, %c0_110] : memref<3x4x32xf32, #tpu.memory_space<vmem>>, vector<1x4x32xf32>
    %184 = vector.shape_cast %183 : vector<1x4x32xf32> to vector<4x32xf32>
    %cst_111 = arith.constant dense<0.000000e+00> : vector<8x32xf32>
    %185 = tpu.matmul %179, %184, %cst_111 {dimension_numbers = #tpu.dot_dimension_numbers<[1], [0], [0], [1], [0, 0, 1, 1], [], []>} : vector<8x4xf32>, vector<4x32xf32>, vector<8x32xf32> -> vector<8x32xf32>
    %186 = arith.addf %182, %185 : vector<8x32xf32>
    %c2_112 = arith.constant 2 : index
    %c0_113 = arith.constant 0 : index
    %c0_114 = arith.constant 0 : index
    %187 = vector.load %arg5[%c2_112, %c0_113, %c0_114] : memref<3x1x32xf32, #tpu.memory_space<vmem>>, vector<1x1x32xf32>
    %188 = vector.shape_cast %187 : vector<1x1x32xf32> to vector<1x32xf32>
    %189 = vector.broadcast %188 : vector<1x32xf32> to vector<8x32xf32>
    %190 = arith.addf %186, %189 : vector<8x32xf32>
    %191 = arith.negf %190 : vector<8x32xf32>
    %192 = math.exp %191 : vector<8x32xf32>
    %cst_115 = arith.constant 1.000000e+00 : f32
    %193 = vector.broadcast %cst_115 : f32 to vector<8x32xf32>
    %194 = arith.addf %193, %192 : vector<8x32xf32>
    %195 = arith.divf %193, %194 : vector<8x32xf32>
    %196 = arith.mulf %190, %195 : vector<8x32xf32>
    %c2_116 = arith.constant 2 : index
    %c0_117 = arith.constant 0 : index
    %c0_118 = arith.constant 0 : index
    %197 = vector.load %arg6[%c2_116, %c0_117, %c0_118] : memref<3x32x32xf32, #tpu.memory_space<vmem>>, vector<1x32x32xf32>
    %198 = vector.shape_cast %197 : vector<1x32x32xf32> to vector<32x32xf32>
    %cst_119 = arith.constant dense<0.000000e+00> : vector<8x32xf32>
    %199 = tpu.matmul %196, %198, %cst_119 {dimension_numbers = #tpu.dot_dimension_numbers<[1], [0], [0], [1], [0, 0, 1, 1], [], []>} : vector<8x32xf32>, vector<32x32xf32>, vector<8x32xf32> -> vector<8x32xf32>
    %c2_120 = arith.constant 2 : index
    %c0_121 = arith.constant 0 : index
    %c0_122 = arith.constant 0 : index
    %200 = vector.load %arg7[%c2_120, %c0_121, %c0_122] : memref<3x1x32xf32, #tpu.memory_space<vmem>>, vector<1x1x32xf32>
    %201 = vector.shape_cast %200 : vector<1x1x32xf32> to vector<1x32xf32>
    %202 = vector.broadcast %201 : vector<1x32xf32> to vector<8x32xf32>
    %203 = arith.addf %199, %202 : vector<8x32xf32>
    %204 = arith.negf %203 : vector<8x32xf32>
    %205 = math.exp %204 : vector<8x32xf32>
    %cst_123 = arith.constant 1.000000e+00 : f32
    %206 = vector.broadcast %cst_123 : f32 to vector<8x32xf32>
    %207 = arith.addf %206, %205 : vector<8x32xf32>
    %208 = arith.divf %206, %207 : vector<8x32xf32>
    %209 = arith.mulf %203, %208 : vector<8x32xf32>
    %c2_124 = arith.constant 2 : index
    %c0_125 = arith.constant 0 : index
    %c0_126 = arith.constant 0 : index
    %210 = vector.load %arg8[%c2_124, %c0_125, %c0_126] : memref<3x32x32xf32, #tpu.memory_space<vmem>>, vector<1x32x32xf32>
    %211 = vector.shape_cast %210 : vector<1x32x32xf32> to vector<32x32xf32>
    %cst_127 = arith.constant dense<0.000000e+00> : vector<8x32xf32>
    %212 = tpu.matmul %209, %211, %cst_127 {dimension_numbers = #tpu.dot_dimension_numbers<[1], [0], [0], [1], [0, 0, 1, 1], [], []>} : vector<8x32xf32>, vector<32x32xf32>, vector<8x32xf32> -> vector<8x32xf32>
    %c2_128 = arith.constant 2 : index
    %c0_129 = arith.constant 0 : index
    %c0_130 = arith.constant 0 : index
    %213 = vector.load %arg9[%c2_128, %c0_129, %c0_130] : memref<3x1x32xf32, #tpu.memory_space<vmem>>, vector<1x1x32xf32>
    %214 = vector.shape_cast %213 : vector<1x1x32xf32> to vector<1x32xf32>
    %215 = vector.broadcast %214 : vector<1x32xf32> to vector<8x32xf32>
    %216 = arith.addf %212, %215 : vector<8x32xf32>
    %217 = arith.negf %216 : vector<8x32xf32>
    %218 = math.exp %217 : vector<8x32xf32>
    %cst_131 = arith.constant 1.000000e+00 : f32
    %219 = vector.broadcast %cst_131 : f32 to vector<8x32xf32>
    %220 = arith.addf %219, %218 : vector<8x32xf32>
    %221 = arith.divf %219, %220 : vector<8x32xf32>
    %222 = arith.mulf %216, %221 : vector<8x32xf32>
    %c2_132 = arith.constant 2 : index
    %c0_133 = arith.constant 0 : index
    %c0_134 = arith.constant 0 : index
    %223 = vector.load %arg10[%c2_132, %c0_133, %c0_134] : memref<3x32x12xf32, #tpu.memory_space<vmem>>, vector<1x32x12xf32>
    %224 = vector.shape_cast %223 : vector<1x32x12xf32> to vector<32x12xf32>
    %cst_135 = arith.constant dense<0.000000e+00> : vector<8x12xf32>
    %225 = tpu.matmul %222, %224, %cst_135 {dimension_numbers = #tpu.dot_dimension_numbers<[1], [0], [0], [1], [0, 0, 1, 1], [], []>} : vector<8x32xf32>, vector<32x12xf32>, vector<8x12xf32> -> vector<8x12xf32>
    %c2_136 = arith.constant 2 : index
    %c0_137 = arith.constant 0 : index
    %c0_138 = arith.constant 0 : index
    %226 = vector.load %arg11[%c2_136, %c0_137, %c0_138] : memref<3x1x12xf32, #tpu.memory_space<vmem>>, vector<1x1x12xf32>
    %227 = vector.shape_cast %226 : vector<1x1x12xf32> to vector<1x12xf32>
    %228 = vector.broadcast %227 : vector<1x12xf32> to vector<8x12xf32>
    %229 = arith.addf %225, %228 : vector<8x12xf32>
    %230 = arith.negf %229 : vector<8x12xf32>
    %231 = math.exp %230 : vector<8x12xf32>
    %cst_139 = arith.constant 1.000000e+00 : f32
    %232 = vector.broadcast %cst_139 : f32 to vector<8x12xf32>
    %233 = arith.addf %232, %231 : vector<8x12xf32>
    %234 = arith.divf %232, %233 : vector<8x12xf32>
    %cst_140 = arith.constant 4.000000e+00 : f32
    %235 = vector.broadcast %cst_140 : f32 to vector<8x12xf32>
    %236 = arith.mulf %235, %234 : vector<8x12xf32>
    %cst_141 = arith.constant -5.000000e+00 : f32
    %237 = vector.broadcast %cst_141 : f32 to vector<8x12xf32>
    %238 = arith.addf %237, %236 : vector<8x12xf32>
    %239 = math.exp %238 : vector<8x12xf32>
    %240 = arith.select %6, %239, %229 : vector<8x12xi1>, vector<8x12xf32>
    %241 = vector.broadcast %2 : vector<1x12xf32> to vector<8x12xf32>
    %242 = arith.mulf %240, %241 : vector<8x12xf32>
    %243 = vector.broadcast %3 : vector<1x12xf32> to vector<8x12xf32>
    %244 = arith.addf %242, %243 : vector<8x12xf32>
    %c2_142 = arith.constant 2 : index
    %c0_143 = arith.constant 0 : index
    %c0_144 = arith.constant 0 : index
    %245 = vector.load %arg16[%c2_142, %c0_143, %c0_144] : memref<3x8x12xf32, #tpu.memory_space<vmem>>, vector<1x8x12xf32>
    %246 = vector.shape_cast %245 : vector<1x8x12xf32> to vector<8x12xf32>
    %247 = vector.shape_cast %244 : vector<8x12xf32> to vector<1x8x12xf32>
    tpu.vector_store %arg16[%c2_142, %c0_143, %c0_144], %247 {strides = array<i32>} : memref<3x8x12xf32, #tpu.memory_space<vmem>>, vector<1x8x12xf32>,
    return
  }
  func.func @transform_0(%arg0: i32) -> (i32, i32, i32) {
    %c0_i32 = arith.constant 0 : i32
    %c0_i32_0 = arith.constant 0 : i32
    %c0_i32_1 = arith.constant 0 : i32
    %c0_i32_2 = arith.constant 0 : i32
    return %c0_i32, %c0_i32_0, %c0_i32_1 : i32, i32, i32
  }
  func.func @transform_1(%arg0: i32) -> (i32, i32, i32) {
    %c0_i32 = arith.constant 0 : i32
    %c0_i32_0 = arith.constant 0 : i32
    %c0_i32_1 = arith.constant 0 : i32
    %c0_i32_2 = arith.constant 0 : i32
    return %c0_i32, %c0_i32_0, %c0_i32_1 : i32, i32, i32
  }
  func.func @transform_2(%arg0: i32) -> (i32, i32, i32) {
    %c0_i32 = arith.constant 0 : i32
    %c0_i32_0 = arith.constant 0 : i32
    %c0_i32_1 = arith.constant 0 : i32
    %c0_i32_2 = arith.constant 0 : i32
    return %c0_i32, %c0_i32_0, %c0_i32_1 : i32, i32, i32
  }
  func.func @transform_3(%arg0: i32) -> (i32, i32, i32) {
    %c0_i32 = arith.constant 0 : i32
    %c0_i32_0 = arith.constant 0 : i32
    %c0_i32_1 = arith.constant 0 : i32
    %c0_i32_2 = arith.constant 0 : i32
    return %c0_i32, %c0_i32_0, %c0_i32_1 : i32, i32, i32
  }
  func.func @transform_4(%arg0: i32) -> (i32, i32, i32) {
    %c0_i32 = arith.constant 0 : i32
    %c0_i32_0 = arith.constant 0 : i32
    %c0_i32_1 = arith.constant 0 : i32
    %c0_i32_2 = arith.constant 0 : i32
    return %c0_i32, %c0_i32_0, %c0_i32_1 : i32, i32, i32
  }
  func.func @transform_5(%arg0: i32) -> (i32, i32, i32) {
    %c0_i32 = arith.constant 0 : i32
    %c0_i32_0 = arith.constant 0 : i32
    %c0_i32_1 = arith.constant 0 : i32
    %c0_i32_2 = arith.constant 0 : i32
    return %c0_i32, %c0_i32_0, %c0_i32_1 : i32, i32, i32
  }
  func.func @transform_6(%arg0: i32) -> (i32, i32, i32) {
    %c0_i32 = arith.constant 0 : i32
    %c0_i32_0 = arith.constant 0 : i32
    %c0_i32_1 = arith.constant 0 : i32
    %c0_i32_2 = arith.constant 0 : i32
    return %c0_i32, %c0_i32_0, %c0_i32_1 : i32, i32, i32
  }
  func.func @transform_7(%arg0: i32) -> (i32, i32, i32) {
    %c0_i32 = arith.constant 0 : i32
    %c0_i32_0 = arith.constant 0 : i32
    %c0_i32_1 = arith.constant 0 : i32
    %c0_i32_2 = arith.constant 0 : i32
    return %c0_i32, %c0_i32_0, %c0_i32_1 : i32, i32, i32
  }
  func.func @transform_8(%arg0: i32) -> (i32, i32, i32) {
    %c0_i32 = arith.constant 0 : i32
    %c0_i32_0 = arith.constant 0 : i32
    %c0_i32_1 = arith.constant 0 : i32
    %c0_i32_2 = arith.constant 0 : i32
    return %c0_i32, %c0_i32_0, %c0_i32_1 : i32, i32, i32
  }
  func.func @transform_9(%arg0: i32) -> (i32, i32, i32) {
    %c0_i32 = arith.constant 0 : i32
    %c0_i32_0 = arith.constant 0 : i32
    %c0_i32_1 = arith.constant 0 : i32
    %c0_i32_2 = arith.constant 0 : i32
    return %c0_i32, %c0_i32_0, %c0_i32_1 : i32, i32, i32
  }
  func.func @transform_10(%arg0: i32) -> (i32, i32, i32) {
    %c0_i32 = arith.constant 0 : i32
    %c0_i32_0 = arith.constant 0 : i32
    %c0_i32_1 = arith.constant 0 : i32
    %c0_i32_2 = arith.constant 0 : i32
    return %c0_i32, %c0_i32_0, %c0_i32_1 : i32, i32, i32
  }
  func.func @transform_11(%arg0: i32) -> (i32, i32) {
    %c0_i32 = arith.constant 0 : i32
    %c0_i32_0 = arith.constant 0 : i32
    %c0_i32_1 = arith.constant 0 : i32
    return %c0_i32, %c0_i32_0 : i32, i32
  }
  func.func @transform_12(%arg0: i32) -> (i32, i32) {
    %c0_i32 = arith.constant 0 : i32
    %c0_i32_0 = arith.constant 0 : i32
    %c0_i32_1 = arith.constant 0 : i32
    return %c0_i32, %c0_i32_0 : i32, i32
  }
  func.func @transform_13(%arg0: i32) -> (i32, i32) {
    %c0_i32 = arith.constant 0 : i32
    %c0_i32_0 = arith.constant 0 : i32
    %c0_i32_1 = arith.constant 0 : i32
    return %c0_i32, %c0_i32_0 : i32, i32
  }
  func.func @transform_14(%arg0: i32) -> (i32, i32) {
    %c0_i32 = arith.constant 0 : i32
    %c0_i32_0 = arith.constant 0 : i32
    %c0_i32_1 = arith.constant 0 : i32
    return %c0_i32, %c0_i32_0 : i32, i32
  }
  func.func @transform_15(%arg0: i32) -> (i32, i32, i32) {
    %c0_i32 = arith.constant 0 : i32
    %c0_i32_0 = arith.constant 0 : i32
    %c0_i32_1 = arith.constant 0 : i32
    %c0_i32_2 = arith.constant 0 : i32
    return %c0_i32, %c0_i32_0, %c0_i32_1 : i32, i32, i32
  }
}

</mosaic_0001>

<bundles_post_ra>
// kernel: ensemble_model_forward.1
= control target key start
LH: loop header
LB: loop body
LE: loop exit
PB: predicated region body
PF: predicated region fallthrough
CT: control target
= control target key end

     0   :  { %20 = vsyncpa [#allocation3], 0  ;;  %s1040_s21 = smov [#allocation2]   ;;  %s1041_s23 = smov 128   ;;  %s1360_s0 = inlined_call_operand.vmem [shape: f32[3,8,6], index: 0, kind: input, shape index: {}]   ;;  %s1361_s1 = inlined_call_operand.vmem [shape: s32[3,8,1], index: 1, kind: input, shape index: {}]   ;;  %s1362_s2 = inlined_call_operand.vmem [shape: f32[3,6,32], index: 2, kind: input, shape index: {}]   ;;  %s1363_s3 = inlined_call_operand.vmem [shape: f32[3,4,32], index: 3, kind: input, shape index: {}]   ;;  %s1364_s4 = inlined_call_operand.vmem [shape: f32[3,1,32], index: 4, kind: input, shape index: {}]   ;;  %s1365_s5 = inlined_call_operand.vmem [shape: f32[3,32,32], index: 5, kind: input, shape index: {}]   ;;  %s1366_s6 = inlined_call_operand.vmem [shape: f32[3,1,32], index: 6, kind: input, shape index: {}]   ;;  %s1367_s7 = inlined_call_operand.hbm [shape: f32[3,32,32], index: 7, kind: input, shape index: {}]   ;;  %s1368_s8 = inlined_call_operand.vmem [shape: f32[3,1,32], index: 8, kind: input, shape index: {}]   ;;  %s1369_s9 = inlined_call_operand.vmem [shape: f32[3,32,12], index: 9, kind: input, shape index: {}]   ;;  %s1370_s10 = inlined_call_operand.vmem [shape: f32[3,1,12], index: 10, kind: input, shape index: {}]   ;;  %s1371_s11 = inlined_call_operand.vmem [shape: f32[1,6], index: 11, kind: input, shape index: {}]   ;;  %s1372_s12 = inlined_call_operand.vmem [shape: f32[1,6], index: 12, kind: input, shape index: {}]   ;;  %s1373_s13 = inlined_call_operand.vmem [shape: f32[1,12], index: 13, kind: input, shape index: {}]   ;;  %s1374_s14 = inlined_call_operand.vmem [shape: f32[1,12], index: 14, kind: input, shape index: {}]   ;;  %s1375_s15 = inlined_call_operand.vmem [shape: f32[3,8,12], index: 15, kind: output, shape index: {}]  }
   0x1   :  { %s39_s20 = sshll.u32 %s1367_s7, 4  ;;  %s41_s22 = sshll.u32 %s1040_s21, 4  ;;  %s40_s20 = int_to_ptr.hbm [resolvable:$true] %s39_s20  ;;  %s42_s22 = int_to_ptr.vmem [resolvable:$true] %s41_s22 }
   0x2   :  { %s1042_s24 = smov 8  }
   0x3   :  { %47 = dma.hbm_to_vmem [thread:$0]  %s40_s20, 1536, %s42_s22, [#allocation3], %s1041_s23, %s1041_s23, %s1042_s24  }
   0x4   :  { %1038 = dma.done.wait [#allocation3], 1536  }
   0x5   :  { %1039 = vsyncadd [#allocation3], 4294965760  ;;  %v1043_v0 = vmov 0   ;;  %v82_v1 = vld [vmem:[%s1361_s1] sm:$0xff]  ;;  %v880_v2 = vld [vmem:[%s1361_s1 + $0x8] sm:$0xff]  ;;  %vm95_vm0 = vcmask 1043456   ;;  %v70_v11 = vlaneseq }
   0x6   :  { %942 = vset.pattern.permute.xlu0 %v1043_v0  ;;  %943 = vset.pattern.permute.xlu1 %v1043_v0  ;;  %v1137_v3 = vld [vmem:[%s1371_s11] ss:$0 sm:$0xff]  ;;  %vm123_vm1 = vcmask 1045504   ;;  %vm119_vm2 = vcmask 48128   ;;  %v883_v10 = vld [vmem:[%s1363_s3 + $0x4] sm:$0xf] }
   0x7   :  { %84 = vperm.xlu0 %942, %v82_v1   ;;  %v73_v4 = vld [vmem:[%s1360_s0] sm:$0xff]  ;;  %v1162_v12 = vand.u32 127, %v70_v11  ;;  %vm91_vm3 = vcmask 31744   ;;  %v1044_v14 = vmov 0.0   ;;  %v175_v18 = vld [vmem:[%s1365_s5 + $0x18] sm:$0xff]  ;;  %v174_v19 = vld [vmem:[%s1365_s5 + $0x10] sm:$0xff] }
   0x8   :  { %v77_v5 = vmul.f32 %v1137_v3, %v73_v4  ;;  %v1146_v6 = vld [vmem:[%s1372_s12] ss:$0 sm:$0xff]  ;;  %196 = vmatpush.msra.mxu2 %v175_v18  ;;  %v173_v20 = vld [vmem:[%s1365_s5 + $0x8] sm:$0xff]  ;;  %v909_v29 = vld [vmem:[%s1361_s1 + $0x10] sm:$0xff]  ;;  %vm180_vm10 = vcmask 261120  }
   0x9   :  { %v90_v7 = vld [vmem:[%s1363_s3] sm:$0xf]  ;;  %v882_v27 = vld [vmem:[%s1362_s2 + $0x8] sm:$0x3f]  ;;  %608 = vperm.xlu1 %943, %v909_v29   ;;  %v227_v46 = vld [vmem:[#allocation2 + $0x18] sm:$0xff] }
   0xa   :  { %v89_v8 = vld [vmem:[%s1362_s2] sm:$0x3f]  ;;  %v81_v9 = vadd.f32 %v1146_v6, %v77_v5  ;;  %868 = vmatpush.msk.msra.mxu0 %vm95_vm0, %v90_v7  ;;  %197 = vmatpush.msra.mxu2 %v174_v19  ;;  %v879_v42 = vld [vmem:[%s1360_s0 + $0x8] sm:$0xff]  ;;  %v226_v47 = vld [vmem:[#allocation2 + $0x10] sm:$0xff] }
   0xb   :  { %870 = vmatpush.msk.msra.mxu1 %vm123_vm1, %v89_v8  ;;  %v172_v21 = vld [vmem:[%s1365_s5] sm:$0xff]  ;;  %v342_v44 = vmul.f32 %v1137_v3, %v879_v42  ;;  %247 = vmatpush.msra.mxu3 %v227_v46  ;;  %v225_v49 = vld [vmem:[#allocation2 + $0x8] sm:$0xff]  ;;  %v893_v54 = vld [vmem:[%s1365_s5 + $0x38] sm:$0xff] }
   0xc   :  { %871 = vmatmul.msk.f32.vlgmr.msra.gmra.mxu1 %vm119_vm2, %v81_v9  ;;  %198 = vmatpush.msra.mxu2 %v173_v20  ;;  %v946_v23 = vld [vmem:[%s1364_s4] ss:$0 sm:$0xff]  ;;  %v892_v55 = vld [vmem:[%s1365_s5 + $0x30] sm:$0xff]  ;;  %v948_v56 = vld [vmem:[%s1364_s4 + $0x1] ss:$0 sm:$0xff] }
   0xd   :  { %884 = vmatpush.msk.msrb.mxu1 %vm95_vm0, %v883_v10  ;;  %v343_v45 = vadd.f32 %v1146_v6, %v342_v44  ;;  %248 = vmatpush.msra.mxu3 %v226_v47  ;;  %v947_v48 = vld [vmem:[%s1366_s6] ss:$0 sm:$0xff]  ;;  %v891_v57 = vld [vmem:[%s1365_s5 + $0x28] sm:$0xff]  ;;  %v491_v42 = vld [vmem:[#allocation2 + $0x38] sm:$0xff] }
   0xe   :  { %199 = vmatpush.msra.mxu2 %v172_v21  ;;  %v224_v50 = vld [vmem:[#allocation2] sm:$0xff]  ;;  %v912_v0 = vld [vmem:[%s1363_s3 + $0x8] sm:$0xf] }
   0xf   :  { %347 = vperm.xlu0 %942, %v880_v2   ;;  %249 = vmatpush.msra.mxu3 %v225_v49  ;;  %v890_v61 = vld [vmem:[%s1365_s5 + $0x20] sm:$0xff] }
  0x10   :  { %886 = vmatpush.msk.msrb.mxu2 %vm123_vm1, %v882_v27  ;;  %v950_v44 = vld [vmem:[%s1366_s6 + $0x1] ss:$0 sm:$0xff] }
  0x11   :  { %250 = vmatpush.msra.mxu3 %v224_v50  ;;  %v488_v46 = vld [vmem:[#allocation2 + $0x20] sm:$0xff] }
  0x13   :  { %459 = vmatpush.msrb.mxu3 %v893_v54 }
  0x15   :  { %460 = vmatpush.msrb.mxu3 %v892_v55 }
  0x17   :  { %461 = vmatpush.msrb.mxu3 %v891_v57 }
  0x19   :  { %462 = vmatpush.msrb.mxu3 %v890_v61 }
  0x79   :  { %v85_v13 = vpop.permute.xlu0 %84 }
  0x7a   :  { %vm86_vm4 = vcmp.eq.s32.totalorder %v1162_v12, %v85_v13 }
  0x7b   :  { %v867_v15 = vsel %vm86_vm4, 1.0, %v1044_v14  ;;  %v609_v1 = vpop.permute.xlu1 %608 }
  0x7c   :  { %869 = vmatmul.msk.f32.vlgmr.msra.gmra.mxu0 %vm91_vm3, %v867_v15  ;;  %vm610_vm11 = vcmp.eq.s32.totalorder %v1162_v12, %v609_v1 }
  0x7d   :  { %v910_v5 = vsel %vm610_vm11, 1.0, %v1044_v14 }
  0x81   :  { %v348_v16 = vpop.permute.xlu0 %347 }
  0x82   :  { %vm349_vm5 = vcmp.eq.s32.totalorder %v1162_v12, %v348_v16 }
  0x83   :  { %v881_v17 = vsel %vm349_vm5, 1.0, %v1044_v14 }
  0x84   :  { %885 = vmatmul.msk.f32.vlgmr.msrb.gmra.mxu1 %vm91_vm3, %v881_v17 }
  0x89   :  { %v144_v22 = vpop.f32.mrf.mxu1 }
  0xf9   :  { %v116_v24 = vpop.f32.mrf.mxu0 }
  0xfa   :  { %v145_v25 = vadd.f32 %v144_v22, %v116_v24 }
  0xfc   :  { %v151_v26 = vadd.f32 %v946_v23, %v145_v25  ;;  %v911_v23 = vld [vmem:[%s1362_s2 + $0x10] sm:$0x3f] }
  0xfe   :  { %v872_v28 = vmul.f32 -1.442695, %v151_v26 }
 0x100   :  { %960 = vpow2.f32 %v872_v28 }
 0x101   :  { %v379_v58 = vpop.f32.mrf.mxu1 }
 0x106   :  { %v961_v30 = vpop.eup %960 }
 0x107   :  { %v155_v31 = vadd.f32 1.0, %v961_v30 }
 0x109   :  { %962 = vrcp.f32 %v155_v31  ;;  %v167_v35 = vand.u32 2147483648, %v155_v31  ;;  %v165_v37 = vand.u32 2147483647, %v155_v31  ;;  %vm161_vm7 = vweird.f32 %v155_v31 }
 0x10b   :  { %v168_v39 = vor.u32 1.1754944e-38, %v167_v35  ;;  %vm166_vm9 = vcmp.eq.f32.partialorder %v165_v37, 8.507059e+37  ;;  %v277_v37 = vld [vmem:[%s1369_s9 + $0x10] sm:$0xff] }
 0x10f   :  { %v963_v32 = vpop.eup %962 }
 0x110   :  { %v157_v33 = vmul.f32 %v963_v32, %v155_v31  ;;  %vm162_vm6 = vweird.f32 %v963_v32 }
 0x111   :  { %vm163_vm8 = vmor %vm161_vm7, %vm162_vm6 }
 0x112   :  { %v158_v34 = vsub.f32 1.0, %v157_v33 }
 0x114   :  { %v159_v36 = vmul.f32 %v963_v32, %v158_v34 }
 0x116   :  { %v160_v38 = vadd.f32 %v963_v32, %v159_v36  ;;  %v278_v36 = vld [vmem:[%s1369_s9 + $0x18] sm:$0xff] }
 0x117   :  { %298 = vmatpush.msrb.mxu0 %v278_v36 }
 0x118   :  { %v164_v40 = vsel %vm163_vm8, %v963_v32, %v160_v38  ;;  %v908_v32 = vld [vmem:[%s1360_s0 + $0x10] sm:$0xff]  ;;  %v949_v38 = vld [vmem:[%s1368_s8] ss:$0 sm:$0xff] }
 0x119   :  { %v169_v41 = vsel %vm166_vm9, %v168_v39, %v164_v40  ;;  %v603_v34 = vmul.f32 %v1137_v3, %v908_v32  ;;  %299 = vmatpush.msrb.mxu0 %v277_v37  ;;  %v276_v3 = vld [vmem:[%s1369_s9 + $0x8] sm:$0xff] }
 0x11a   :  { %v171_v43 = vmul.f32 %v169_v41, %v151_v26 }
 0x11b   :  { %v604_v35 = vadd.f32 %v1146_v6, %v603_v34  ;;  %300 = vmatpush.msrb.mxu0 %v276_v3  ;;  %v275_v6 = vld [vmem:[%s1369_s9] sm:$0xff] }
 0x11c   :  { %873 = vmatmul.msk.f32.vlgmr.msra.gmra.mxu2 %vm180_vm10, %v171_v43  ;;  %v490_v43 = vld [vmem:[#allocation2 + $0x30] sm:$0xff] }
 0x11d   :  { %913 = vmatpush.msk.msra.mxu2 %vm95_vm0, %v912_v0  ;;  %301 = vmatpush.msrb.mxu0 %v275_v6 }
 0x11f   :  { %512 = vmatpush.msra.mxu0 %v491_v42  ;;  %v955_v42 = vld [vmem:[%s1368_s8 + $0x1] ss:$0 sm:$0xff] }
 0x121   :  { %513 = vmatpush.msra.mxu0 %v490_v43  ;;  %v901_v43 = vld [vmem:[%s1369_s9 + $0x28] sm:$0xff] }
 0x124   :  { %887 = vmatmul.msk.f32.vlgmr.msrb.gmra.mxu2 %vm119_vm2, %v343_v45  ;;  %v489_v45 = vld [vmem:[#allocation2 + $0x28] sm:$0xff] }
 0x125   :  { %514 = vmatpush.msra.mxu0 %v489_v45 }
 0x127   :  { %515 = vmatpush.msra.mxu0 %v488_v46 }
 0x12c   :  { %914 = vmatmul.msk.f32.vlgmr.msra.gmra.mxu2 %vm91_vm3, %v910_v5 }
 0x19f   :  { %v201_v51 = vpop.f32.mrf.mxu2 }
 0x1a0   :  { %v202_v52 = vadd.f32 %v947_v48, %v201_v51 }
 0x1a2   :  { %v874_v53 = vmul.f32 -1.442695, %v202_v52 }
 0x1a4   :  { %964 = vpow2.f32 %v874_v53  ;;  %v951_v53 = vld [vmem:[%s1364_s4 + $0x2] ss:$0 sm:$0xff] }
 0x1a7   :  { %v405_v59 = vpop.f32.mrf.mxu2 }
 0x1a8   :  { %v406_v60 = vadd.f32 %v405_v59, %v379_v58 }
 0x1aa   :  { %v965_v62 = vpop.eup %964  ;;  %v413_v63 = vadd.f32 %v948_v56, %v406_v60 }
 0x1ab   :  { %v207_v2 = vadd.f32 1.0, %v965_v62 }
 0x1ac   :  { %v889_v4 = vmul.f32 -1.442695, %v413_v63 }
 0x1ad   :  { %966 = vrcp.f32 %v207_v2  ;;  %v219_v13 = vand.u32 2147483648, %v207_v2  ;;  %v217_v16 = vand.u32 2147483647, %v207_v2  ;;  %vm213_vm13 = vweird.f32 %v207_v2 }
 0x1ae   :  { %968 = vpow2.f32 %v889_v4 }
 0x1af   :  { %v220_v18 = vor.u32 1.1754944e-38, %v219_v13  ;;  %vm218_vm15 = vcmp.eq.f32.partialorder %v217_v16, 8.507059e+37  ;;  %v922_v13 = vld [vmem:[%s1365_s5 + $0x58] sm:$0xff] }
 0x1b3   :  { %v967_v7 = vpop.eup %966 }
 0x1b4   :  { %v969_v8 = vpop.eup %968  ;;  %v209_v9 = vmul.f32 %v967_v7, %v207_v2  ;;  %vm214_vm12 = vweird.f32 %v967_v7 }
 0x1b5   :  { %v417_v10 = vadd.f32 1.0, %v969_v8  ;;  %vm215_vm14 = vmor %vm213_vm13, %vm214_vm12 }
 0x1b6   :  { %v210_v11 = vsub.f32 1.0, %v209_v9 }
 0x1b7   :  { %970 = vrcp.f32 %v417_v10  ;;  %v429_v25 = vand.u32 2147483648, %v417_v10  ;;  %v427_v27 = vand.u32 2147483647, %v417_v10  ;;  %vm423_vm3 = vweird.f32 %v417_v10 }
 0x1b8   :  { %v211_v15 = vmul.f32 %v967_v7, %v210_v11 }
 0x1b9   :  { %v430_v29 = vor.u32 1.1754944e-38, %v429_v25  ;;  %vm428_vm5 = vcmp.eq.f32.partialorder %v427_v27, 8.507059e+37 }
 0x1ba   :  { %v212_v17 = vadd.f32 %v967_v7, %v211_v15 }
 0x1bc   :  { %v216_v19 = vsel %vm215_vm14, %v967_v7, %v212_v17  ;;  %v921_v17 = vld [vmem:[%s1365_s5 + $0x50] sm:$0xff] }
 0x1bd   :  { %v971_v14 = vpop.eup %970  ;;  %v221_v20 = vsel %vm218_vm15, %v220_v18, %v216_v19 }
 0x1be   :  { %v223_v21 = vmul.f32 %v221_v20, %v202_v52  ;;  %v419_v22 = vmul.f32 %v971_v14, %v417_v10  ;;  %vm424_vm0 = vweird.f32 %v971_v14  ;;  %v640_v52 = vpop.f32.mrf.mxu2  ;;  %v920_v20 = vld [vmem:[%s1365_s5 + $0x48] sm:$0xff] }
 0x1bf   :  { %vm425_vm4 = vmor %vm423_vm3, %vm424_vm0 }
 0x1c0   :  { %v420_v24 = vsub.f32 1.0, %v419_v22  ;;  %875 = vmatmul.msk.f32.vlgmr.msra.gmra.mxu3 %vm180_vm10, %v223_v21  ;;  %v919_v22 = vld [vmem:[%s1365_s5 + $0x40] sm:$0xff] }
 0x1c1   :  { %915 = vmatpush.msk.msra.mxu3 %vm123_vm1, %v911_v23 }
 0x1c2   :  { %v421_v26 = vmul.f32 %v971_v14, %v420_v24 }
 0x1c4   :  { %v422_v28 = vadd.f32 %v971_v14, %v421_v26 }
 0x1c6   :  { %v426_v30 = vsel %vm425_vm4, %v971_v14, %v422_v28 }
 0x1c7   :  { %v431_v31 = vsel %vm428_vm5, %v430_v29, %v426_v30 }
 0x1c8   :  { %v433_v33 = vmul.f32 %v431_v31, %v413_v63 }
 0x1ca   :  { %895 = vmatmul.msk.f32.vlgmr.msrb.gmra.mxu3 %vm180_vm10, %v433_v33 }
 0x1d2   :  { %916 = vmatmul.msk.f32.vlgmr.msra.gmra.mxu3 %vm119_vm2, %v604_v35 }
 0x243   :  { %v252_v39 = vpop.f32.mrf.mxu3 }
 0x244   :  { %v253_v40 = vadd.f32 %v949_v38, %v252_v39  ;;  %v952_v38 = vld [vmem:[%s1370_s10] ss:$0 sm:$0xff] }
 0x246   :  { %v876_v41 = vmul.f32 -1.442695, %v253_v40 }
 0x248   :  { %972 = vpow2.f32 %v876_v41  ;;  %v902_v41 = vld [vmem:[%s1369_s9 + $0x30] sm:$0xff] }
 0x24d   :  { %v464_v47 = vpop.f32.mrf.mxu3 }
 0x24e   :  { %v973_v48 = vpop.eup %972  ;;  %v465_v49 = vadd.f32 %v950_v44, %v464_v47  ;;  %v900_v44 = vld [vmem:[%s1369_s9 + $0x20] sm:$0xff] }
 0x24f   :  { %v258_v50 = vadd.f32 1.0, %v973_v48 }
 0x250   :  { %v896_v51 = vmul.f32 -1.442695, %v465_v49 }
 0x251   :  { %974 = vrcp.f32 %v258_v50  ;;  %v270_v63 = vand.u32 2147483648, %v258_v50  ;;  %v268_v1 = vand.u32 2147483647, %v258_v50  ;;  %vm264_vm2 = vweird.f32 %v258_v50 }
 0x252   :  { %976 = vpow2.f32 %v896_v51  ;;  %v751_v51 = vld [vmem:[#allocation2 + $0x50] sm:$0xff] }
 0x253   :  { %v271_v4 = vor.u32 1.1754944e-38, %v270_v63  ;;  %vm269_vm7 = vcmp.eq.f32.partialorder %v268_v1, 8.507059e+37 }
 0x255   :  { %v666_v54 = vpop.f32.mrf.mxu3 }
 0x256   :  { %v667_v55 = vadd.f32 %v666_v54, %v640_v52  ;;  %v956_v52 = vld [vmem:[%s1366_s6 + $0x2] ss:$0 sm:$0xff] }
 0x257   :  { %v975_v56 = vpop.eup %974  ;;  %v749_v54 = vld [vmem:[#allocation2 + $0x40] sm:$0xff] }
 0x258   :  { %v977_v57 = vpop.eup %976  ;;  %v260_v58 = vmul.f32 %v975_v56, %v258_v50  ;;  %v674_v59 = vadd.f32 %v951_v53, %v667_v55  ;;  %vm265_vm1 = vweird.f32 %v975_v56  ;;  %v752_v50 = vld [vmem:[#allocation2 + $0x58] sm:$0xff]  ;;  %v750_v53 = vld [vmem:[#allocation2 + $0x48] sm:$0xff] }
 0x259   :  { %v470_v60 = vadd.f32 1.0, %v977_v57  ;;  %vm266_vm6 = vmor %vm264_vm2, %vm265_vm1 }
 0x25a   :  { %v261_v61 = vsub.f32 1.0, %v260_v58  ;;  %v918_v62 = vmul.f32 -1.442695, %v674_v59 }
 0x25b   :  { %978 = vrcp.f32 %v470_v60  ;;  %v482_v18 = vand.u32 2147483648, %v470_v60  ;;  %v480_v14 = vand.u32 2147483647, %v470_v60  ;;  %vm476_vm9 = vweird.f32 %v470_v60 }
 0x25c   :  { %v262_v0 = vmul.f32 %v975_v56, %v261_v61  ;;  %980 = vpow2.f32 %v918_v62 }
 0x25d   :  { %v483_v23 = vor.u32 1.1754944e-38, %v482_v18  ;;  %vm481_vm12 = vcmp.eq.f32.partialorder %v480_v14, 8.507059e+37 }
 0x25e   :  { %v263_v2 = vadd.f32 %v975_v56, %v262_v0 }
 0x260   :  { %v267_v5 = vsel %vm266_vm6, %v975_v56, %v263_v2 }
 0x261   :  { %v979_v7 = vpop.eup %978  ;;  %v272_v8 = vsel %vm269_vm7, %v271_v4, %v267_v5 }
 0x262   :  { %v981_v9 = vpop.eup %980  ;;  %v274_v10 = vmul.f32 %v272_v8, %v253_v40  ;;  %v472_v11 = vmul.f32 %v979_v7, %v470_v60  ;;  %vm477_vm8 = vweird.f32 %v979_v7  ;;  %v903_v40 = vld [vmem:[%s1369_s9 + $0x38] sm:$0xff] }
 0x263   :  { %v678_v15 = vadd.f32 1.0, %v981_v9  ;;  %vm478_vm11 = vmor %vm476_vm9, %vm477_vm8  ;;  %565 = vmatpush.msra.mxu1 %v903_v40  ;;  %vm72_vm9 = vcmp.ge.s32.totalorder %v1162_v12, 6  ;;  %v957_v40 = vld [vmem:[%s1370_s10 + $0x1] ss:$0 sm:$0xff] }
 0x264   :  { %v473_v16 = vsub.f32 1.0, %v472_v11  ;;  %877 = vmatmul.msk.f32.vlgmr.msrb.gmra.mxu0 %vm180_vm10, %v274_v10 }
 0x265   :  { %982 = vrcp.f32 %v678_v15  ;;  %720 = vmatpush.msrb.mxu0 %v922_v13  ;;  %v690_v30 = vand.u32 2147483648, %v678_v15  ;;  %v688_v32 = vand.u32 2147483647, %v678_v15  ;;  %vm684_vm14 = vweird.f32 %v678_v15  ;;  %566 = vmatpush.msra.mxu1 %v902_v41 }
 0x266   :  { %v474_v19 = vmul.f32 %v979_v7, %v473_v16 }
 0x267   :  { %721 = vmatpush.msrb.mxu0 %v921_v17  ;;  %v691_v34 = vor.u32 1.1754944e-38, %v690_v30  ;;  %vm689_vm0 = vcmp.eq.f32.partialorder %v688_v32, 8.507059e+37  ;;  %567 = vmatpush.msra.mxu1 %v901_v43 }
 0x268   :  { %v475_v21 = vadd.f32 %v979_v7, %v474_v19 }
 0x269   :  { %722 = vmatpush.msrb.mxu0 %v920_v20  ;;  %568 = vmatpush.msra.mxu1 %v900_v44  ;;  %v932_v44 = vld [vmem:[%s1369_s9 + $0x58] sm:$0xff] }
 0x26a   :  { %v479_v24 = vsel %vm478_vm11, %v979_v7, %v475_v21  ;;  %826 = vmatpush.msrb.mxu2 %v932_v44 }
 0x26b   :  { %v983_v25 = vpop.eup %982  ;;  %v484_v26 = vsel %vm481_vm12, %v483_v23, %v479_v24  ;;  %723 = vmatpush.msrb.mxu0 %v919_v22  ;;  %773 = vmatpush.msrb.mxu1 %v752_v50  ;;  %vm338_vm12 = vcmask 97280  }
 0x26c   :  { %v486_v27 = vmul.f32 %v484_v26, %v465_v49  ;;  %v680_v28 = vmul.f32 %v983_v25, %v678_v15  ;;  %vm685_vm13 = vweird.f32 %v983_v25 }
 0x26d   :  { %vm686_vm15 = vmor %vm684_vm14, %vm685_vm13  ;;  %774 = vmatpush.msrb.mxu1 %v751_v51 }
 0x26e   :  { %v681_v29 = vsub.f32 1.0, %v680_v28  ;;  %898 = vmatmul.msk.f32.vlgmr.msra.gmra.mxu0 %vm180_vm10, %v486_v27 }
 0x26f   :  { %775 = vmatpush.msrb.mxu1 %v750_v53 }
 0x270   :  { %v682_v31 = vmul.f32 %v983_v25, %v681_v29  ;;  %v1308_v29 = vld [vmem:[%s1374_s14] ss:$0 sm:$0xff] }
 0x271   :  { %776 = vmatpush.msrb.mxu1 %v749_v54 }
 0x272   :  { %v683_v33 = vadd.f32 %v983_v25, %v682_v31 }
 0x274   :  { %v687_v35 = vsel %vm686_vm15, %v983_v25, %v683_v33  ;;  %v1303_v25 = vld [vmem:[%s1373_s13] ss:$0 sm:$0xff] }
 0x275   :  { %v692_v36 = vsel %vm689_vm0, %v691_v34, %v687_v35 }
 0x276   :  { %v694_v37 = vmul.f32 %v692_v36, %v674_v59 }
 0x278   :  { %924 = vmatmul.msk.f32.vlgmr.msrb.gmra.mxu0 %vm180_vm10, %v694_v37 }
 0x2e1   :  { %v303_v3 = vpop.f32.mrf.mxu0 }
 0x2e2   :  { %v1275_v6 = vadd.f32 %v952_v38, %v303_v3 }
 0x2e4   :  { %v878_v39 = vmul.f32 -1.442695, %v1275_v6 }
 0x2e6   :  { %984 = vpow2.f32 %v878_v39 }
 0x2eb   :  { %v517_v45 = vpop.f32.mrf.mxu0 }
 0x2ec   :  { %v985_v46 = vpop.eup %984  ;;  %v518_v47 = vadd.f32 %v955_v42, %v517_v45  ;;  %v931_v45 = vld [vmem:[%s1369_s9 + $0x50] sm:$0xff] }
 0x2ed   :  { %v309_v48 = vadd.f32 1.0, %v985_v46  ;;  %827 = vmatpush.msrb.mxu2 %v931_v45  ;;  %v958_v46 = vld [vmem:[%s1368_s8 + $0x2] ss:$0 sm:$0xff] }
 0x2ee   :  { %v899_v49 = vmul.f32 -1.442695, %v518_v47 }
 0x2ef   :  { %986 = vrcp.f32 %v309_v48  ;;  %v321_v63 = vand.u32 2147483648, %v309_v48  ;;  %v319_v1 = vand.u32 2147483647, %v309_v48  ;;  %vm315_vm4 = vweird.f32 %v309_v48 }
 0x2f0   :  { %988 = vpow2.f32 %v899_v49 }
 0x2f1   :  { %v322_v4 = vor.u32 1.1754944e-38, %v321_v63  ;;  %vm320_vm1 = vcmp.eq.f32.partialorder %v319_v1, 8.507059e+37 }
 0x2f5   :  { %v987_v55 = vpop.eup %986  ;;  %v725_v56 = vpop.f32.mrf.mxu0 }
 0x2f6   :  { %v989_v57 = vpop.eup %988  ;;  %v311_v58 = vmul.f32 %v987_v55, %v309_v48  ;;  %v1296_v59 = vadd.f32 %v956_v52, %v725_v56  ;;  %vm316_vm3 = vweird.f32 %v987_v55  ;;  %v929_v48 = vld [vmem:[%s1369_s9 + $0x40] sm:$0xff] }
 0x2f7   :  { %v523_v60 = vadd.f32 1.0, %v989_v57  ;;  %vm317_vm5 = vmor %vm315_vm4, %vm316_vm3 }
 0x2f8   :  { %v312_v61 = vsub.f32 1.0, %v311_v58  ;;  %v925_v62 = vmul.f32 -1.442695, %v1296_v59 }
 0x2f9   :  { %990 = vrcp.f32 %v523_v60  ;;  %v535_v17 = vand.u32 2147483648, %v523_v60  ;;  %v533_v14 = vand.u32 2147483647, %v523_v60  ;;  %vm529_vm6 = vweird.f32 %v523_v60 }
 0x2fa   :  { %v313_v0 = vmul.f32 %v987_v55, %v312_v61  ;;  %992 = vpow2.f32 %v925_v62 }
 0x2fb   :  { %v536_v21 = vor.u32 1.1754944e-38, %v535_v17  ;;  %vm534_vm8 = vcmp.eq.f32.partialorder %v533_v14, 8.507059e+37 }
 0x2fc   :  { %v314_v2 = vadd.f32 %v987_v55, %v313_v0 }
 0x2fe   :  { %v318_v5 = vsel %vm317_vm5, %v987_v55, %v314_v2 }
 0x2ff   :  { %v991_v7 = vpop.eup %990  ;;  %v323_v8 = vsel %vm320_vm1, %v322_v4, %v318_v5 }
 0x300   :  { %v993_v9 = vpop.eup %992  ;;  %v325_v10 = vmul.f32 4.0, %v323_v8  ;;  %v525_v11 = vmul.f32 %v991_v7, %v523_v60  ;;  %vm530_vm2 = vweird.f32 %v991_v7 }
 0x301   :  { %v731_v13 = vadd.f32 1.0, %v993_v9  ;;  %vm531_vm7 = vmor %vm529_vm6, %vm530_vm2 }
 0x302   :  { %v326_v15 = vadd.f32 -5.0, %v325_v10  ;;  %v526_v16 = vsub.f32 1.0, %v525_v11 }
 0x303   :  { %994 = vrcp.f32 %v731_v13  ;;  %v743_v32 = vand.u32 2147483648, %v731_v13  ;;  %v741_v35 = vand.u32 2147483647, %v731_v13  ;;  %vm737_vm13 = vweird.f32 %v731_v13 }
 0x304   :  { %v327_v18 = vmul.f32 1.442695, %v326_v15  ;;  %v527_v19 = vmul.f32 %v991_v7, %v526_v16 }
 0x305   :  { %v744_v38 = vor.u32 1.1754944e-38, %v743_v32  ;;  %vm742_vm15 = vcmp.eq.f32.partialorder %v741_v35, 8.507059e+37 }
 0x306   :  { %996 = vpow2.f32 %v327_v18  ;;  %v528_v20 = vadd.f32 %v991_v7, %v527_v19 }
 0x308   :  { %v532_v22 = vsel %vm531_vm7, %v991_v7, %v528_v20 }
 0x309   :  { %v995_v23 = vpop.eup %994  ;;  %v537_v24 = vsel %vm534_vm8, %v536_v21, %v532_v22 }
 0x30a   :  { %v539_v26 = vmul.f32 %v537_v24, %v518_v47  ;;  %v733_v27 = vmul.f32 %v995_v23, %v731_v13  ;;  %vm738_vm11 = vweird.f32 %v995_v23  ;;  %v930_v47 = vld [vmem:[%s1369_s9 + $0x48] sm:$0xff] }
 0x30b   :  { %vm739_vm14 = vmor %vm737_vm13, %vm738_vm11  ;;  %828 = vmatpush.msrb.mxu2 %v930_v47 }
 0x30c   :  { %v997_v28 = vpop.eup %996  ;;  %v734_v30 = vsub.f32 1.0, %v733_v27  ;;  %905 = vmatmul.msk.f32.vlgmr.msra.gmra.mxu1 %vm180_vm10, %v539_v26 }
 0x30d   :  { %v329_v31 = vsel %vm72_vm9, %v997_v28, %v1275_v6  ;;  %829 = vmatpush.msrb.mxu2 %v929_v48 }
 0x30e   :  { %v333_v33 = vmul.f32 %v1303_v25, %v329_v31  ;;  %v735_v34 = vmul.f32 %v995_v23, %v734_v30 }
 0x310   :  { %v337_v36 = vadd.f32 %v1308_v29, %v333_v33  ;;  %v736_v37 = vadd.f32 %v995_v23, %v735_v34 }
 0x312   :  { %339 = vst.msk [vmem:[%s1375_s15] sm:$0xff] %vm338_vm12, %v337_v36  ;;  %v740_v3 = vsel %vm739_vm14, %v995_v23, %v736_v37  ;;  %v959_v23 = vld [vmem:[%s1370_s10 + $0x2] ss:$0 sm:$0xff] }
 0x313   :  { %v745_v6 = vsel %vm742_vm15, %v744_v38, %v740_v3 }
 0x314   :  { %v747_v39 = vmul.f32 %v745_v6, %v1296_v59 }
 0x316   :  { %927 = vmatmul.msk.f32.vlgmr.msrb.gmra.mxu1 %vm180_vm10, %v747_v39 }
 0x389   :  { %v570_v41 = vpop.f32.mrf.mxu1 }
 0x38a   :  { %v571_v42 = vadd.f32 %v957_v40, %v570_v41 }
 0x38c   :  { %v906_v43 = vmul.f32 -1.442695, %v571_v42 }
 0x38e   :  { %998 = vpow2.f32 %v906_v43 }
 0x393   :  { %v778_v49 = vpop.f32.mrf.mxu1 }
 0x394   :  { %v999_v50 = vpop.eup %998  ;;  %v779_v51 = vadd.f32 %v958_v46, %v778_v49 }
 0x395   :  { %v576_v52 = vadd.f32 1.0, %v999_v50 }
 0x396   :  { %v928_v53 = vmul.f32 -1.442695, %v779_v51 }
 0x397   :  { %1000 = vrcp.f32 %v576_v52  ;;  %v588_v59 = vand.u32 2147483648, %v576_v52  ;;  %v586_v61 = vand.u32 2147483647, %v576_v52  ;;  %vm582_vm3 = vweird.f32 %v576_v52 }
 0x398   :  { %1002 = vpow2.f32 %v928_v53 }
 0x399   :  { %v589_v63 = vor.u32 1.1754944e-38, %v588_v59  ;;  %vm587_vm5 = vcmp.eq.f32.partialorder %v586_v61, 8.507059e+37 }
 0x39d   :  { %v1001_v54 = vpop.eup %1000 }
 0x39e   :  { %v1003_v55 = vpop.eup %1002  ;;  %v578_v56 = vmul.f32 %v1001_v54, %v576_v52  ;;  %vm583_vm0 = vweird.f32 %v1001_v54 }
 0x39f   :  { %v784_v57 = vadd.f32 1.0, %v1003_v55  ;;  %vm584_vm4 = vmor %vm582_vm3, %vm583_vm0 }
 0x3a0   :  { %v579_v58 = vsub.f32 1.0, %v578_v56 }
 0x3a1   :  { %1004 = vrcp.f32 %v784_v57  ;;  %v796_v9 = vand.u32 2147483648, %v784_v57  ;;  %v794_v13 = vand.u32 2147483647, %v784_v57  ;;  %vm790_vm2 = vweird.f32 %v784_v57 }
 0x3a2   :  { %v580_v60 = vmul.f32 %v1001_v54, %v579_v58 }
 0x3a3   :  { %v797_v16 = vor.u32 1.1754944e-38, %v796_v9  ;;  %vm795_vm7 = vcmp.eq.f32.partialorder %v794_v13, 8.507059e+37 }
 0x3a4   :  { %v581_v62 = vadd.f32 %v1001_v54, %v580_v60 }
 0x3a6   :  { %v585_v0 = vsel %vm584_vm4, %v1001_v54, %v581_v62 }
 0x3a7   :  { %v1005_v1 = vpop.eup %1004  ;;  %v590_v2 = vsel %vm587_vm5, %v589_v63, %v585_v0 }
 0x3a8   :  { %v592_v4 = vmul.f32 4.0, %v590_v2  ;;  %v786_v5 = vmul.f32 %v1005_v1, %v784_v57  ;;  %vm791_vm1 = vweird.f32 %v1005_v1 }
 0x3a9   :  { %vm792_vm6 = vmor %vm790_vm2, %vm791_vm1 }
 0x3aa   :  { %v593_v7 = vadd.f32 -5.0, %v592_v4  ;;  %v787_v8 = vsub.f32 1.0, %v786_v5 }
 0x3ac   :  { %v594_v10 = vmul.f32 1.442695, %v593_v7  ;;  %v788_v11 = vmul.f32 %v1005_v1, %v787_v8 }
 0x3ae   :  { %1006 = vpow2.f32 %v594_v10  ;;  %v789_v15 = vadd.f32 %v1005_v1, %v788_v11 }
 0x3b0   :  { %v793_v17 = vsel %vm792_vm6, %v1005_v1, %v789_v15 }
 0x3b1   :  { %v798_v18 = vsel %vm795_vm7, %v797_v16, %v793_v17 }
 0x3b2   :  { %v800_v19 = vmul.f32 %v798_v18, %v779_v51 }
 0x3b4   :  { %v1007_v14 = vpop.eup %1006  ;;  %934 = vmatmul.msk.f32.vlgmr.msrb.gmra.mxu2 %vm180_vm10, %v800_v19 }
 0x3b5   :  { %v596_v20 = vsel %vm72_vm9, %v1007_v14, %v571_v42 }
 0x3b6   :  { %v597_v21 = vmul.f32 %v1303_v25, %v596_v20 }
 0x3b8   :  { %v598_v22 = vadd.f32 %v1308_v29, %v597_v21 }
 0x3ba   :  { %907 = vst.msk [vmem:[%s1375_s15 + $0x8] sm:$0xff] %vm338_vm12, %v598_v22 }
 0x437   :  { %v831_v24 = vpop.f32.mrf.mxu2 }
 0x438   :  { %v832_v26 = vadd.f32 %v959_v23, %v831_v24 }
 0x43a   :  { %v935_v27 = vmul.f32 -1.442695, %v832_v26 }
 0x43c   :  { %1008 = vpow2.f32 %v935_v27 }
 0x442   :  { %v1009_v28 = vpop.eup %1008 }
 0x443   :  { %v837_v30 = vadd.f32 1.0, %v1009_v28 }
 0x445   :  { %1010 = vrcp.f32 %v837_v30  ;;  %v849_v34 = vand.u32 2147483648, %v837_v30  ;;  %v847_v36 = vand.u32 2147483647, %v837_v30  ;;  %vm843_vm8 = vweird.f32 %v837_v30 }
 0x447   :  { %v850_v38 = vor.u32 1.1754944e-38, %v849_v34  ;;  %vm848_vm13 = vcmp.eq.f32.partialorder %v847_v36, 8.507059e+37 }
 0x44b   :  { %v1011_v31 = vpop.eup %1010 }
 0x44c   :  { %v839_v32 = vmul.f32 %v1011_v31, %v837_v30  ;;  %vm844_vm10 = vweird.f32 %v1011_v31 }
 0x44d   :  { %vm845_vm11 = vmor %vm843_vm8, %vm844_vm10 }
 0x44e   :  { %v840_v33 = vsub.f32 1.0, %v839_v32 }
 0x450   :  { %v841_v35 = vmul.f32 %v1011_v31, %v840_v33 }
 0x452   :  { %v842_v37 = vadd.f32 %v1011_v31, %v841_v35 }
 0x454   :  { %v846_v3 = vsel %vm845_vm11, %v1011_v31, %v842_v37 }
 0x455   :  { %v851_v6 = vsel %vm848_vm13, %v850_v38, %v846_v3 }
 0x456   :  { %v853_v39 = vmul.f32 4.0, %v851_v6 }
 0x458   :  { %v854_v40 = vadd.f32 -5.0, %v853_v39 }
 0x45a   :  { %v855_v41 = vmul.f32 1.442695, %v854_v40 }
 0x45c   :  { %1012 = vpow2.f32 %v855_v41 }
 0x462   :  { %v1013_v42 = vpop.eup %1012 }
 0x463   :  { %v857_v43 = vsel %vm72_vm9, %v1013_v42, %v832_v26 }
 0x464   :  { %v858_v44 = vmul.f32 %v1303_v25, %v857_v43 }
 0x466   :  { %v859_v45 = vadd.f32 %v1308_v29, %v858_v44 }
 0x468   :  { %936 = vst.msk [vmem:[%s1375_s15 + $0x10] sm:$0xff] %vm338_vm12, %v859_v45 }
 0x469   :  { %866 = vsyncpa [#allocation3], 1 }

</bundles_post_ra>
